<compile_context>
chip_gen: v7x
topology: tpu7x:2x2x1
jax: 0.10.0
libtpu: 0.0.40
codegen_flags: <defaults>
</compile_context>

<pallas_src>
import functools

import jax
import jax.numpy as jnp
import numpy as np
from jax.experimental import pallas as pl
from jax.experimental.pallas import tpu as pltpu


def _hm_update_kernel(label_ref, x_ref, feat_ref, out_ref, *, momentum, batch):
    """Sequential momentum update of the feature bank, bank carried in a vreg.

    label_ref : SMEM (B,)    int32, -1 == unlabeled
    x_ref     : VMEM (B, D)  soft predictions
    feat_ref  : VMEM (NC, D) current feature bank (aliased with out_ref)
    out_ref   : VMEM (NC, D) updated feature bank
    """
    nc = out_ref.shape[0]
    # (NC, 1) row ids -> one-hot row selection; avoids dynamic sublane slicing.
    row_ids = jax.lax.broadcasted_iota(jnp.int32, (nc, 1), 0)

    # Single VMEM load: whole bank (8x20 f32) is a fraction of one [8,128] vreg.
    bank = feat_ref[...]

    # Sequential over the batch: duplicate labels must apply in order, exactly
    # like the Python for-loop in HM.backward.  `batch` is tiny and static, so a
    # Python unroll with the bank as a register-carried value is fine.
    for i in range(batch):
        y = label_ref[i]                               # scalar from SMEM
        x = x_ref[pl.ds(i, 1), :]                      # (1, D)
        blended = momentum * bank + (1.0 - momentum) * x            # (NC, D)
        inv_norm = jax.lax.rsqrt(
            jnp.sum(blended * blended, axis=1, keepdims=True))       # (NC, 1) EUP
        normalized = blended * inv_norm
        sel = jnp.logical_and(row_ids == y, y != -1)   # (NC, 1), picks row y only
        bank = jnp.where(sel, normalized, bank)        # stays in vregs

    # Single VMEM store.
    out_ref[...] = bank


@functools.partial(jax.jit, static_argnames=("momentum",))
def hm_update_features(features, method_soft, label, *, momentum):
    """Grid-less Pallas call: one tile, no software-pipeline machinery."""
    nc, d = features.shape
    b = method_soft.shape[0]
    kernel = functools.partial(
        _hm_update_kernel, momentum=float(momentum), batch=int(b))
    return pl.pallas_call(
        kernel,
        out_shape=jax.ShapeDtypeStruct((nc, d), features.dtype),
        in_specs=[
            pl.BlockSpec(memory_space=pltpu.MemorySpace.SMEM),   # label (scalars)
            pl.BlockSpec(memory_space=pltpu.MemorySpace.VMEM),   # method_soft
            pl.BlockSpec(memory_space=pltpu.MemorySpace.VMEM),   # features
        ],
        out_specs=pl.BlockSpec(memory_space=pltpu.MemorySpace.VMEM),
        # Update the feature bank in place: no second (NC, D) HBM buffer.
        input_output_aliases={2: 0},
    )(label, method_soft, features)


class HybridMemory:
    """JAX mirror of the PyTorch HybridMemory module."""

    def __init__(self, momentum=0.2):
        self.momentum = momentum
        # register_buffer('features', torch.zeros(8, 20)) — deterministic init.
        self.features = jnp.zeros((8, 20), dtype=jnp.float32)

    def __call__(self, method_soft, label):
        # HM.forward returns `inputs` unchanged.  Return the identity directly
        # (XLA aliases buffers) instead of paying pallas_call dispatch + a VMEM
        # round trip for 640 bytes.
        del label
        return method_soft

    def update_features(self, method_soft, label):
        # TODO(synk): in PyTorch this momentum bank update runs inside HM.backward
        # (autograd side effect); here it is an explicit method.  If many training
        # steps are issued back-to-back, batch T steps per kernel ((T, B, D) /
        # (T, B) inputs) to amortize the per-call dispatch cost.
        self.features = hm_update_features(
            self.features, method_soft, label, momentum=self.momentum)
        return self.features


def _reference_update(features, method_soft, label, momentum):
    """Pure-numpy mirror of HM.backward's memory-bank update."""
    feats = np.array(features, dtype=np.float32)
    xs = np.array(method_soft, dtype=np.float32)
    ys = np.array(label)
    for x, y in zip(xs, ys):
        if y == -1:
            continue
        feats[y] = momentum * feats[y] + (1.0 - momentum) * x
        feats[y] = feats[y] / np.linalg.norm(feats[y])
    return feats


if __name__ == "__main__":
    key = jax.random.PRNGKey(0)
    k1, k2 = jax.random.split(key)

    B, D, NC = 8, 20, 8  # feature bank is (8, 20) -> soft predictions have D = 20
    method_soft = jax.random.normal(k1, (B, D), dtype=jnp.float32)
    # labels in [0, 8) with some entries -1 (unlabeled), as the module expects
    label = jax.random.randint(k2, (B,), -1, NC, dtype=jnp.int32)

    memory = HybridMemory(momentum=0.2)

    # Forward: identity on method_soft (no Pallas — zero-overhead per review).
    out = memory(method_soft, label)
    out = jax.block_until_ready(out)
    assert out.shape == (B, D) and out.dtype == method_soft.dtype
    assert bool(jnp.allclose(out, method_soft)), "forward must be identity"

    # Reference for the memory-bank update, computed before the (aliased) kernel.
    ref_feats = _reference_update(memory.features, method_soft, label,
                                  memory.momentum)

    # Run the fused Pallas memory-bank update kernel once.
    new_feats = memory.update_features(method_soft, label)
    new_feats = jax.block_until_ready(new_feats)

    assert new_feats.shape == (NC, D) and new_feats.dtype == jnp.float32
    assert np.allclose(np.array(new_feats), ref_feats, rtol=1e-4, atol=1e-4), (
        "feature-bank momentum update mismatch")

    print("KERNEL_OK")
</pallas_src>

<mosaic_0001>
module attributes {stable_mosaic.version = 11 : i64} {
  func.func @_hm_update_kernel(%arg0: memref<8xi32, #tpu.memory_space<smem>>, %arg1: memref<8x20xf32, #tpu.memory_space<vmem>>, %arg2: memref<8x20xf32, #tpu.memory_space<vmem>>, %arg3: memref<8x20xf32, #tpu.memory_space<vmem>>) attributes {dimension_semantics = [], scalar_prefetch = 0 : i64, scratch_operands = 0 : i64, tpu.core_type = #tpu.core_type<tc>} {
    %0 = tpu.iota {dimensions = array<i32: 0>} : vector<8x1xi32>
    %c0 = arith.constant 0 : index
    %c0_0 = arith.constant 0 : index
    %1 = vector.load %arg2[%c0, %c0_0] : memref<8x20xf32, #tpu.memory_space<vmem>>, vector<8x20xf32>
    %c0_1 = arith.constant 0 : index
    %2 = memref.load %arg0[%c0_1] : memref<8xi32, #tpu.memory_space<smem>>
    %c0_2 = arith.constant 0 : index
    %c0_3 = arith.constant 0 : index
    %3 = vector.load %arg1[%c0_2, %c0_3] : memref<8x20xf32, #tpu.memory_space<vmem>>, vector<1x20xf32>
    %cst = arith.constant 2.000000e-01 : f32
    %4 = vector.broadcast %cst : f32 to vector<8x20xf32>
    %5 = arith.mulf %4, %1 : vector<8x20xf32>
    %cst_4 = arith.constant 8.000000e-01 : f32
    %6 = vector.broadcast %cst_4 : f32 to vector<1x20xf32>
    %7 = arith.mulf %6, %3 : vector<1x20xf32>
    %8 = vector.broadcast %7 : vector<1x20xf32> to vector<8x20xf32>
    %9 = arith.addf %5, %8 : vector<8x20xf32>
    %10 = arith.mulf %9, %9 : vector<8x20xf32>
    %cst_5 = arith.constant dense<0.000000e+00> : vector<8xf32>
    %11 = vector.multi_reduction <add>, %10, %cst_5 [1] : vector<8x20xf32> to vector<8xf32>
    %12 = vector.shape_cast %11 : vector<8xf32> to vector<8x1xf32>
    %13 = math.rsqrt %12 : vector<8x1xf32>
    %14 = vector.broadcast %13 : vector<8x1xf32> to vector<8x20xf32>
    %15 = arith.mulf %9, %14 : vector<8x20xf32>
    %16 = vector.broadcast %2 : i32 to vector<8x1xi32>
    %17 = arith.cmpi eq, %0, %16 : vector<8x1xi32>
    %c-1_i32 = arith.constant -1 : i32
    %18 = arith.cmpi ne, %2, %c-1_i32 : i32
    %19 = vector.broadcast %18 : i1 to vector<8x1xi1>
    %20 = arith.andi %17, %19 : vector<8x1xi1>
    %21 = vector.shape_cast %20 : vector<8x1xi1> to vector<8x1xi1>
    %22 = vector.broadcast %21 : vector<8x1xi1> to vector<8x20xi1>
    %23 = arith.select %22, %15, %1 : vector<8x20xi1>, vector<8x20xf32>
    %c1 = arith.constant 1 : index
    %24 = memref.load %arg0[%c1] : memref<8xi32, #tpu.memory_space<smem>>
    %c1_6 = arith.constant 1 : index
    %c0_7 = arith.constant 0 : index
    %25 = vector.load %arg1[%c1_6, %c0_7] : memref<8x20xf32, #tpu.memory_space<vmem>>, vector<1x20xf32>
    %cst_8 = arith.constant 2.000000e-01 : f32
    %26 = vector.broadcast %cst_8 : f32 to vector<8x20xf32>
    %27 = arith.mulf %26, %23 : vector<8x20xf32>
    %cst_9 = arith.constant 8.000000e-01 : f32
    %28 = vector.broadcast %cst_9 : f32 to vector<1x20xf32>
    %29 = arith.mulf %28, %25 : vector<1x20xf32>
    %30 = vector.broadcast %29 : vector<1x20xf32> to vector<8x20xf32>
    %31 = arith.addf %27, %30 : vector<8x20xf32>
    %32 = arith.mulf %31, %31 : vector<8x20xf32>
    %cst_10 = arith.constant dense<0.000000e+00> : vector<8xf32>
    %33 = vector.multi_reduction <add>, %32, %cst_10 [1] : vector<8x20xf32> to vector<8xf32>
    %34 = vector.shape_cast %33 : vector<8xf32> to vector<8x1xf32>
    %35 = math.rsqrt %34 : vector<8x1xf32>
    %36 = vector.broadcast %35 : vector<8x1xf32> to vector<8x20xf32>
    %37 = arith.mulf %31, %36 : vector<8x20xf32>
    %38 = vector.broadcast %24 : i32 to vector<8x1xi32>
    %39 = arith.cmpi eq, %0, %38 : vector<8x1xi32>
    %c-1_i32_11 = arith.constant -1 : i32
    %40 = arith.cmpi ne, %24, %c-1_i32_11 : i32
    %41 = vector.broadcast %40 : i1 to vector<8x1xi1>
    %42 = arith.andi %39, %41 : vector<8x1xi1>
    %43 = vector.shape_cast %42 : vector<8x1xi1> to vector<8x1xi1>
    %44 = vector.broadcast %43 : vector<8x1xi1> to vector<8x20xi1>
    %45 = arith.select %44, %37, %23 : vector<8x20xi1>, vector<8x20xf32>
    %c2 = arith.constant 2 : index
    %46 = memref.load %arg0[%c2] : memref<8xi32, #tpu.memory_space<smem>>
    %c2_12 = arith.constant 2 : index
    %c0_13 = arith.constant 0 : index
    %47 = vector.load %arg1[%c2_12, %c0_13] : memref<8x20xf32, #tpu.memory_space<vmem>>, vector<1x20xf32>
    %cst_14 = arith.constant 2.000000e-01 : f32
    %48 = vector.broadcast %cst_14 : f32 to vector<8x20xf32>
    %49 = arith.mulf %48, %45 : vector<8x20xf32>
    %cst_15 = arith.constant 8.000000e-01 : f32
    %50 = vector.broadcast %cst_15 : f32 to vector<1x20xf32>
    %51 = arith.mulf %50, %47 : vector<1x20xf32>
    %52 = vector.broadcast %51 : vector<1x20xf32> to vector<8x20xf32>
    %53 = arith.addf %49, %52 : vector<8x20xf32>
    %54 = arith.mulf %53, %53 : vector<8x20xf32>
    %cst_16 = arith.constant dense<0.000000e+00> : vector<8xf32>
    %55 = vector.multi_reduction <add>, %54, %cst_16 [1] : vector<8x20xf32> to vector<8xf32>
    %56 = vector.shape_cast %55 : vector<8xf32> to vector<8x1xf32>
    %57 = math.rsqrt %56 : vector<8x1xf32>
    %58 = vector.broadcast %57 : vector<8x1xf32> to vector<8x20xf32>
    %59 = arith.mulf %53, %58 : vector<8x20xf32>
    %60 = vector.broadcast %46 : i32 to vector<8x1xi32>
    %61 = arith.cmpi eq, %0, %60 : vector<8x1xi32>
    %c-1_i32_17 = arith.constant -1 : i32
    %62 = arith.cmpi ne, %46, %c-1_i32_17 : i32
    %63 = vector.broadcast %62 : i1 to vector<8x1xi1>
    %64 = arith.andi %61, %63 : vector<8x1xi1>
    %65 = vector.shape_cast %64 : vector<8x1xi1> to vector<8x1xi1>
    %66 = vector.broadcast %65 : vector<8x1xi1> to vector<8x20xi1>
    %67 = arith.select %66, %59, %45 : vector<8x20xi1>, vector<8x20xf32>
    %c3 = arith.constant 3 : index
    %68 = memref.load %arg0[%c3] : memref<8xi32, #tpu.memory_space<smem>>
    %c3_18 = arith.constant 3 : index
    %c0_19 = arith.constant 0 : index
    %69 = vector.load %arg1[%c3_18, %c0_19] : memref<8x20xf32, #tpu.memory_space<vmem>>, vector<1x20xf32>
    %cst_20 = arith.constant 2.000000e-01 : f32
    %70 = vector.broadcast %cst_20 : f32 to vector<8x20xf32>
    %71 = arith.mulf %70, %67 : vector<8x20xf32>
    %cst_21 = arith.constant 8.000000e-01 : f32
    %72 = vector.broadcast %cst_21 : f32 to vector<1x20xf32>
    %73 = arith.mulf %72, %69 : vector<1x20xf32>
    %74 = vector.broadcast %73 : vector<1x20xf32> to vector<8x20xf32>
    %75 = arith.addf %71, %74 : vector<8x20xf32>
    %76 = arith.mulf %75, %75 : vector<8x20xf32>
    %cst_22 = arith.constant dense<0.000000e+00> : vector<8xf32>
    %77 = vector.multi_reduction <add>, %76, %cst_22 [1] : vector<8x20xf32> to vector<8xf32>
    %78 = vector.shape_cast %77 : vector<8xf32> to vector<8x1xf32>
    %79 = math.rsqrt %78 : vector<8x1xf32>
    %80 = vector.broadcast %79 : vector<8x1xf32> to vector<8x20xf32>
    %81 = arith.mulf %75, %80 : vector<8x20xf32>
    %82 = vector.broadcast %68 : i32 to vector<8x1xi32>
    %83 = arith.cmpi eq, %0, %82 : vector<8x1xi32>
    %c-1_i32_23 = arith.constant -1 : i32
    %84 = arith.cmpi ne, %68, %c-1_i32_23 : i32
    %85 = vector.broadcast %84 : i1 to vector<8x1xi1>
    %86 = arith.andi %83, %85 : vector<8x1xi1>
    %87 = vector.shape_cast %86 : vector<8x1xi1> to vector<8x1xi1>
    %88 = vector.broadcast %87 : vector<8x1xi1> to vector<8x20xi1>
    %89 = arith.select %88, %81, %67 : vector<8x20xi1>, vector<8x20xf32>
    %c4 = arith.constant 4 : index
    %90 = memref.load %arg0[%c4] : memref<8xi32, #tpu.memory_space<smem>>
    %c4_24 = arith.constant 4 : index
    %c0_25 = arith.constant 0 : index
    %91 = vector.load %arg1[%c4_24, %c0_25] : memref<8x20xf32, #tpu.memory_space<vmem>>, vector<1x20xf32>
    %cst_26 = arith.constant 2.000000e-01 : f32
    %92 = vector.broadcast %cst_26 : f32 to vector<8x20xf32>
    %93 = arith.mulf %92, %89 : vector<8x20xf32>
    %cst_27 = arith.constant 8.000000e-01 : f32
    %94 = vector.broadcast %cst_27 : f32 to vector<1x20xf32>
    %95 = arith.mulf %94, %91 : vector<1x20xf32>
    %96 = vector.broadcast %95 : vector<1x20xf32> to vector<8x20xf32>
    %97 = arith.addf %93, %96 : vector<8x20xf32>
    %98 = arith.mulf %97, %97 : vector<8x20xf32>
    %cst_28 = arith.constant dense<0.000000e+00> : vector<8xf32>
    %99 = vector.multi_reduction <add>, %98, %cst_28 [1] : vector<8x20xf32> to vector<8xf32>
    %100 = vector.shape_cast %99 : vector<8xf32> to vector<8x1xf32>
    %101 = math.rsqrt %100 : vector<8x1xf32>
    %102 = vector.broadcast %101 : vector<8x1xf32> to vector<8x20xf32>
    %103 = arith.mulf %97, %102 : vector<8x20xf32>
    %104 = vector.broadcast %90 : i32 to vector<8x1xi32>
    %105 = arith.cmpi eq, %0, %104 : vector<8x1xi32>
    %c-1_i32_29 = arith.constant -1 : i32
    %106 = arith.cmpi ne, %90, %c-1_i32_29 : i32
    %107 = vector.broadcast %106 : i1 to vector<8x1xi1>
    %108 = arith.andi %105, %107 : vector<8x1xi1>
    %109 = vector.shape_cast %108 : vector<8x1xi1> to vector<8x1xi1>
    %110 = vector.broadcast %109 : vector<8x1xi1> to vector<8x20xi1>
    %111 = arith.select %110, %103, %89 : vector<8x20xi1>, vector<8x20xf32>
    %c5 = arith.constant 5 : index
    %112 = memref.load %arg0[%c5] : memref<8xi32, #tpu.memory_space<smem>>
    %c5_30 = arith.constant 5 : index
    %c0_31 = arith.constant 0 : index
    %113 = vector.load %arg1[%c5_30, %c0_31] : memref<8x20xf32, #tpu.memory_space<vmem>>, vector<1x20xf32>
    %cst_32 = arith.constant 2.000000e-01 : f32
    %114 = vector.broadcast %cst_32 : f32 to vector<8x20xf32>
    %115 = arith.mulf %114, %111 : vector<8x20xf32>
    %cst_33 = arith.constant 8.000000e-01 : f32
    %116 = vector.broadcast %cst_33 : f32 to vector<1x20xf32>
    %117 = arith.mulf %116, %113 : vector<1x20xf32>
    %118 = vector.broadcast %117 : vector<1x20xf32> to vector<8x20xf32>
    %119 = arith.addf %115, %118 : vector<8x20xf32>
    %120 = arith.mulf %119, %119 : vector<8x20xf32>
    %cst_34 = arith.constant dense<0.000000e+00> : vector<8xf32>
    %121 = vector.multi_reduction <add>, %120, %cst_34 [1] : vector<8x20xf32> to vector<8xf32>
    %122 = vector.shape_cast %121 : vector<8xf32> to vector<8x1xf32>
    %123 = math.rsqrt %122 : vector<8x1xf32>
    %124 = vector.broadcast %123 : vector<8x1xf32> to vector<8x20xf32>
    %125 = arith.mulf %119, %124 : vector<8x20xf32>
    %126 = vector.broadcast %112 : i32 to vector<8x1xi32>
    %127 = arith.cmpi eq, %0, %126 : vector<8x1xi32>
    %c-1_i32_35 = arith.constant -1 : i32
    %128 = arith.cmpi ne, %112, %c-1_i32_35 : i32
    %129 = vector.broadcast %128 : i1 to vector<8x1xi1>
    %130 = arith.andi %127, %129 : vector<8x1xi1>
    %131 = vector.shape_cast %130 : vector<8x1xi1> to vector<8x1xi1>
    %132 = vector.broadcast %131 : vector<8x1xi1> to vector<8x20xi1>
    %133 = arith.select %132, %125, %111 : vector<8x20xi1>, vector<8x20xf32>
    %c6 = arith.constant 6 : index
    %134 = memref.load %arg0[%c6] : memref<8xi32, #tpu.memory_space<smem>>
    %c6_36 = arith.constant 6 : index
    %c0_37 = arith.constant 0 : index
    %135 = vector.load %arg1[%c6_36, %c0_37] : memref<8x20xf32, #tpu.memory_space<vmem>>, vector<1x20xf32>
    %cst_38 = arith.constant 2.000000e-01 : f32
    %136 = vector.broadcast %cst_38 : f32 to vector<8x20xf32>
    %137 = arith.mulf %136, %133 : vector<8x20xf32>
    %cst_39 = arith.constant 8.000000e-01 : f32
    %138 = vector.broadcast %cst_39 : f32 to vector<1x20xf32>
    %139 = arith.mulf %138, %135 : vector<1x20xf32>
    %140 = vector.broadcast %139 : vector<1x20xf32> to vector<8x20xf32>
    %141 = arith.addf %137, %140 : vector<8x20xf32>
    %142 = arith.mulf %141, %141 : vector<8x20xf32>
    %cst_40 = arith.constant dense<0.000000e+00> : vector<8xf32>
    %143 = vector.multi_reduction <add>, %142, %cst_40 [1] : vector<8x20xf32> to vector<8xf32>
    %144 = vector.shape_cast %143 : vector<8xf32> to vector<8x1xf32>
    %145 = math.rsqrt %144 : vector<8x1xf32>
    %146 = vector.broadcast %145 : vector<8x1xf32> to vector<8x20xf32>
    %147 = arith.mulf %141, %146 : vector<8x20xf32>
    %148 = vector.broadcast %134 : i32 to vector<8x1xi32>
    %149 = arith.cmpi eq, %0, %148 : vector<8x1xi32>
    %c-1_i32_41 = arith.constant -1 : i32
    %150 = arith.cmpi ne, %134, %c-1_i32_41 : i32
    %151 = vector.broadcast %150 : i1 to vector<8x1xi1>
    %152 = arith.andi %149, %151 : vector<8x1xi1>
    %153 = vector.shape_cast %152 : vector<8x1xi1> to vector<8x1xi1>
    %154 = vector.broadcast %153 : vector<8x1xi1> to vector<8x20xi1>
    %155 = arith.select %154, %147, %133 : vector<8x20xi1>, vector<8x20xf32>
    %c7 = arith.constant 7 : index
    %156 = memref.load %arg0[%c7] : memref<8xi32, #tpu.memory_space<smem>>
    %c7_42 = arith.constant 7 : index
    %c0_43 = arith.constant 0 : index
    %157 = vector.load %arg1[%c7_42, %c0_43] : memref<8x20xf32, #tpu.memory_space<vmem>>, vector<1x20xf32>
    %cst_44 = arith.constant 2.000000e-01 : f32
    %158 = vector.broadcast %cst_44 : f32 to vector<8x20xf32>
    %159 = arith.mulf %158, %155 : vector<8x20xf32>
    %cst_45 = arith.constant 8.000000e-01 : f32
    %160 = vector.broadcast %cst_45 : f32 to vector<1x20xf32>
    %161 = arith.mulf %160, %157 : vector<1x20xf32>
    %162 = vector.broadcast %161 : vector<1x20xf32> to vector<8x20xf32>
    %163 = arith.addf %159, %162 : vector<8x20xf32>
    %164 = arith.mulf %163, %163 : vector<8x20xf32>
    %cst_46 = arith.constant dense<0.000000e+00> : vector<8xf32>
    %165 = vector.multi_reduction <add>, %164, %cst_46 [1] : vector<8x20xf32> to vector<8xf32>
    %166 = vector.shape_cast %165 : vector<8xf32> to vector<8x1xf32>
    %167 = math.rsqrt %166 : vector<8x1xf32>
    %168 = vector.broadcast %167 : vector<8x1xf32> to vector<8x20xf32>
    %169 = arith.mulf %163, %168 : vector<8x20xf32>
    %170 = vector.broadcast %156 : i32 to vector<8x1xi32>
    %171 = arith.cmpi eq, %0, %170 : vector<8x1xi32>
    %c-1_i32_47 = arith.constant -1 : i32
    %172 = arith.cmpi ne, %156, %c-1_i32_47 : i32
    %173 = vector.broadcast %172 : i1 to vector<8x1xi1>
    %174 = arith.andi %171, %173 : vector<8x1xi1>
    %175 = vector.shape_cast %174 : vector<8x1xi1> to vector<8x1xi1>
    %176 = vector.broadcast %175 : vector<8x1xi1> to vector<8x20xi1>
    %177 = arith.select %176, %169, %155 : vector<8x20xi1>, vector<8x20xf32>
    %c0_48 = arith.constant 0 : index
    %c0_49 = arith.constant 0 : index
    %178 = vector.load %arg3[%c0_48, %c0_49] : memref<8x20xf32, #tpu.memory_space<vmem>>, vector<8x20xf32>
    tpu.vector_store %arg3[%c0_48, %c0_49], %177 {strides = array<i32>} : memref<8x20xf32, #tpu.memory_space<vmem>>, vector<8x20xf32>,
    return
  }
}

</mosaic_0001>

<bundles_post_ra>
// kernel: hm_update_features.1
= control target key start
LH: loop header
LB: loop body
LE: loop exit
PB: predicated region body
PF: predicated region fallthrough
CT: control target
= control target key end

     0   :  { %8 = vsyncpa [#allocation5], 0  ;;  %s453_s0 = inlined_call_operand.vmem [shape: s32[8], index: 0, kind: input, shape index: {}]   ;;  %s454_s1 = inlined_call_operand.vmem [shape: f32[8,20], index: 1, kind: input, shape index: {}]   ;;  %s455_s2 = inlined_call_operand.hbm [shape: f32[8,20], index: 2, kind: input, shape index: {}, may-alias: {2,3}]   ;;  %s456_s3 = inlined_call_operand.hbm [shape: f32[8,20], index: 3, kind: output, shape index: {}, may-alias: {2,3}]  }
   0x1   :  { %9 = vsyncpa [#allocation3], 0 }
   0x2   :  { %10 = vsyncpa [#allocation4], 0  ;;  %s17_s14 = sshll.u32 %s453_s0, 4  ;;  %s18_s14 = int_to_ptr.vmem [resolvable:$true] %s17_s14 }
   0x3   :  { %s287_s15 = scalar_lea.vmem %s18_s14, 16  ;;  %p292_p1 = scmp.lt.s32.totalorder %s18_s14, %s18_s14 }
   0x4   :  { %p288_p0 = scmp.ne.s32.totalorder %s18_s14, %s287_s15  ;;  %p293_p2 = scmp.lt.s32.totalorder %s287_s15, %s287_s15 }
   0x6   :  { %p294_p3 = por %p293_p2, %p292_p1 }
   0x8   :  { %p295_p4 = pnand %p294_p3, %p288_p0 }
   0xa   :  { %298 = shalt.err (!%p295_p4)
}
   0xb   :  { %s349_s16 = smov [#allocation2]   ;;  %s350_s17 = smov [#allocation6]  }
   0xc   :  { %20 = dma.vmem_to_smem %s18_s14, 16, %s349_s16, [#allocation5]  }
   0xd   :  { %s29_s18 = sshll.u32 %s350_s17, 4  ;;  %s299_s21 = scalar_lea.hbm %s455_s2, 128  ;;  %s30_s18 = int_to_ptr.vmem [resolvable:$true] %s29_s18 }
   0xe   :  { %p300_p5 = scmp.ne.s32.totalorder %s455_s2, %s299_s21  ;;  %p303_p6 = scmp.lt.u32.totalorder %s299_s21, %s455_s2 }
  0x10   :  { %p305_p7 = pnand %p303_p6, %p300_p5 }
  0x12   :  { %308 = shalt.err (!%p305_p7)
}
  0x13   :  { %s309_s25 = scalar_lea.vmem %s30_s18, 128  ;;  %p314_p9 = scmp.lt.s32.totalorder %s30_s18, %s30_s18 }
  0x14   :  { %p310_p8 = scmp.ne.s32.totalorder %s30_s18, %s309_s25  ;;  %p315_p10 = scmp.lt.s32.totalorder %s309_s25, %s309_s25 }
  0x16   :  { %p316_p11 = por %p315_p10, %p314_p9 }
  0x18   :  { %p317_p12 = pnand %p316_p11, %p310_p8 }
  0x1a   :  { %320 = shalt.err (!%p317_p12)
}
  0x1b   :  { %32 = dma.hbm_to_vmem [thread:$0]  %s455_s2, 128, %s30_s18, [#allocation3]  }
  0x1c   :  { %343 = dma.done.wait [#allocation5], 16  }
  0x1d   :  { %344 = vsyncadd [#allocation5], 4294967280 }
  0x1e   :  { %345 = dma.done.wait [#allocation3], 128  }
  0x1f   :  { %346 = vsyncadd [#allocation3], 4294967168 }
  0x20   :  { %39 = sfence }
  0x21   :  { %v40_v0 = vlaneseq  ;;  %v44_v1 = vld [vmem:[%s454_s1] sm:$0x1]  ;;  %v42_v2 = vld [vmem:[#allocation6] sm:$0xff]  ;;  %vm53_vm0 = vcmask 162816   ;;  %s43_s2 = sld [smem:[#allocation2]]  ;;  %s261_s6 = sld [smem:[#allocation2 + $0x1]] }
  0x22   :  { %v46_v4 = vmul.f32 0.8, %v44_v1  ;;  %v45_v5 = vmul.f32 0.2, %v42_v2  ;;  %v70_v14 = vld [vmem:[%s454_s1 + $0x1] sm:$0x1] }
  0x23   :  { %v390_v3 = vshrl.u32 %v40_v0, 7  ;;  %v72_v15 = vmul.f32 0.8, %v70_v14  ;;  %v95_v27 = vld [vmem:[%s454_s1 + $0x2] sm:$0x1]  ;;  %s262_s10 = sld [smem:[#allocation2 + $0x2]] }
  0x24   :  { %v97_v28 = vmul.f32 0.8, %v95_v27  ;;  %v120_v40 = vld [vmem:[%s454_s1 + $0x3] sm:$0x1]  ;;  %s263_s14 = sld [smem:[#allocation2 + $0x3]]  ;;  %s264_s18 = sld [smem:[#allocation2 + $0x4]] }
  0x25   :  { %v393_v6 = vsub.s32 0, %v390_v3  ;;  %v122_v41 = vmul.f32 0.8, %v120_v40  ;;  %v145_v53 = vld [vmem:[%s454_s1 + $0x4] sm:$0x1]  ;;  %s265_s22 = sld [smem:[#allocation2 + $0x5]] }
  0x26   :  { %v147_v54 = vmul.f32 0.8, %v145_v53  ;;  %s266_s25 = sld [smem:[#allocation2 + $0x6]]  ;;  %s267_s29 = sld [smem:[#allocation2 + $0x7]] }
  0x27   :  { %v50_v7 = vrot.slane %v46_v4, %v393_v6  ;;  %p61_p13 = scmp.ne.s32.totalorder %s43_s2, 4294967295  ;;  %v59_v12 = vstv %s43_s2  ;;  %v76_v18 = vrot.slane %v72_v15, %v393_v6  ;;  %p86_p0 = scmp.ne.s32.totalorder %s261_s6, 4294967295  ;;  %v84_v25 = vstv %s261_s6 }
  0x28   :  { %vm60_vm1 = vcmp.eq.s32.totalorder %v390_v3, %v59_v12  ;;  %vm85_vm4 = vcmp.eq.s32.totalorder %v390_v3, %v84_v25  ;;  %v101_v31 = vrot.slane %v97_v28, %v393_v6  ;;  %v126_v44 = vrot.slane %v122_v41, %v393_v6  ;;  %s351_s2 = smov [#allocation7]  }
  0x29   :  { %v51_v8 = vadd.f32 %v50_v7, %v45_v5  ;;  %s62_s30 = scalar_select %p61_p13, 1, 0  ;;  %v109_v38 = vstv %s262_s10  ;;  %v151_v57 = vrot.slane %v147_v54, %v393_v6 }
  0x2a   :  { %s87_s7 = scalar_select %p86_p0, 1, 0  ;;  %vm110_vm7 = vcmp.eq.s32.totalorder %v390_v3, %v109_v38  ;;  %v134_v51 = vstv %s263_s14  ;;  %v159_v0 = vstv %s264_s18 }
  0x2b   :  { %v52_v9 = vmul.f32 %v51_v8, %v51_v8  ;;  %v63_v13 = vstv %s62_s30  ;;  %p111_p1 = scmp.ne.s32.totalorder %s262_s10, 4294967295  ;;  %p136_p2 = scmp.ne.s32.totalorder %s263_s14, 4294967295  ;;  %vm135_vm10 = vcmp.eq.s32.totalorder %v390_v3, %v134_v51  ;;  %vm160_vm13 = vcmp.eq.s32.totalorder %v390_v3, %v159_v0 }
  0x2c   :  { %vm64_vm2 = vcmp.eq.s32.totalorder %v63_v13, 1  ;;  %v88_v26 = vstv %s87_s7  ;;  %p161_p3 = scmp.ne.s32.totalorder %s264_s18, 4294967295  ;;  %p186_p4 = scmp.ne.s32.totalorder %s265_s22, 4294967295  ;;  %v184_v15 = vstv %s265_s22  ;;  %v209_v28 = vstv %s266_s25 }
  0x2d   :  { %v54_v10 = vsel %vm53_vm0, %v52_v9, 0.0  ;;  %vm65_vm3 = vmand %vm60_vm1, %vm64_vm2  ;;  %vm89_vm5 = vcmp.eq.s32.totalorder %v88_v26, 1  ;;  %s112_s11 = scalar_select %p111_p1, 1, 0  ;;  %vm185_vm1 = vcmp.eq.s32.totalorder %v390_v3, %v184_v15  ;;  %v234_v41 = vstv %s267_s29 }
  0x2e   :  { %55 = vadd.xlane.f32.xlu0 %v54_v10  ;;  %vm90_vm6 = vmand %vm85_vm4, %vm89_vm5  ;;  %s137_s15 = scalar_select %p136_p2, 1, 0  ;;  %vm210_vm4 = vcmp.eq.s32.totalorder %v390_v3, %v209_v28 }
  0x2f   :  { %v113_v39 = vstv %s112_s11  ;;  %s162_s19 = scalar_select %p161_p3, 1, 0 }
  0x30   :  { %vm114_vm8 = vcmp.eq.s32.totalorder %v113_v39, 1  ;;  %v138_v52 = vstv %s137_s15  ;;  %s187_s23 = scalar_select %p186_p4, 1, 0 }
  0x31   :  { %vm115_vm9 = vmand %vm110_vm7, %vm114_vm8  ;;  %vm139_vm11 = vcmp.eq.s32.totalorder %v138_v52, 1  ;;  %v163_v1 = vstv %s162_s19  ;;  %p211_p5 = scmp.ne.s32.totalorder %s266_s25, 4294967295  ;;  %p236_p6 = scmp.ne.s32.totalorder %s267_s29, 4294967295  ;;  %vm235_vm7 = vcmp.eq.s32.totalorder %v390_v3, %v234_v41 }
  0x32   :  { %vm140_vm12 = vmand %vm135_vm10, %vm139_vm11  ;;  %vm164_vm14 = vcmp.eq.s32.totalorder %v163_v1, 1  ;;  %s251_s30 = sshll.u32 %s351_s2, 4  ;;  %s252_s30 = int_to_ptr.vmem [resolvable:$true] %s251_s30 }
  0x33   :  { %vm165_vm15 = vmand %vm160_vm13, %vm164_vm14  ;;  %s212_s26 = scalar_select %p211_p5, 1, 0 }
  0x34   :  { %s321_s4 = scalar_lea.vmem %s252_s30, 128  ;;  %p326_p8 = scmp.lt.s32.totalorder %s252_s30, %s252_s30 }
  0x35   :  { %p322_p7 = scmp.ne.s32.totalorder %s252_s30, %s321_s4  ;;  %p327_p9 = scmp.lt.s32.totalorder %s321_s4, %s321_s4 }
  0x37   :  { %p328_p10 = por %p327_p9, %p326_p8 }
  0x39   :  { %p329_p11 = pnand %p328_p10, %p322_p7 }
  0xbb   :  { %v56_v11 = vpop.xlane.xlu0 %55 }
  0xbc   :  { %271 = vrsqrt.f32 %v56_v11 }
  0xc6   :  { %v272_v16 = vpop.eup %271 }
  0xc7   :  { %v58_v17 = vmul.f32 %v272_v16, %v51_v8  ;;  %v188_v16 = vstv %s187_s23 }
  0xc8   :  { %vm189_vm2 = vcmp.eq.s32.totalorder %v188_v16, 1 }
  0xc9   :  { %v68_v19 = vsel %vm65_vm3, %v58_v17, %v42_v2  ;;  %v170_v2 = vld [vmem:[%s454_s1 + $0x5] sm:$0x1]  ;;  %v195_v17 = vld [vmem:[%s454_s1 + $0x6] sm:$0x1]  ;;  %vm190_vm3 = vmand %vm185_vm1, %vm189_vm2 }
  0xca   :  { %v71_v20 = vmul.f32 0.2, %v68_v19  ;;  %v172_v4 = vmul.f32 0.8, %v170_v2 }
  0xcc   :  { %v77_v21 = vadd.f32 %v76_v18, %v71_v20  ;;  %v176_v8 = vrot.slane %v172_v4, %v393_v6  ;;  %v197_v18 = vmul.f32 0.8, %v195_v17 }
  0xce   :  { %v78_v22 = vmul.f32 %v77_v21, %v77_v21 }
  0xd0   :  { %v79_v23 = vsel %vm53_vm0, %v78_v22, 0.0 }
  0xd1   :  { %80 = vadd.xlane.f32.xlu0 %v79_v23 }
 0x15e   :  { %v81_v24 = vpop.xlane.xlu0 %80 }
 0x15f   :  { %273 = vrsqrt.f32 %v81_v24 }
 0x169   :  { %v274_v29 = vpop.eup %273 }
 0x16a   :  { %v83_v30 = vmul.f32 %v274_v29, %v77_v21  ;;  %v201_v21 = vrot.slane %v197_v18, %v393_v6  ;;  %v213_v29 = vstv %s212_s26 }
 0x16b   :  { %vm214_vm5 = vcmp.eq.s32.totalorder %v213_v29, 1 }
 0x16c   :  { %v93_v32 = vsel %vm90_vm6, %v83_v30, %v68_v19  ;;  %v220_v30 = vld [vmem:[%s454_s1 + $0x7] sm:$0x1]  ;;  %vm215_vm6 = vmand %vm210_vm4, %vm214_vm5  ;;  %s237_s1 = scalar_select %p236_p6, 1, 0 }
 0x16d   :  { %v96_v33 = vmul.f32 0.2, %v93_v32 }
 0x16f   :  { %v102_v34 = vadd.f32 %v101_v31, %v96_v33  ;;  %v222_v31 = vmul.f32 0.8, %v220_v30 }
 0x171   :  { %v103_v35 = vmul.f32 %v102_v34, %v102_v34 }
 0x173   :  { %v104_v36 = vsel %vm53_vm0, %v103_v35, 0.0 }
 0x174   :  { %105 = vadd.xlane.f32.xlu1 %v104_v36 }
 0x201   :  { %v106_v37 = vpop.xlane.xlu1 %105 }
 0x202   :  { %275 = vrsqrt.f32 %v106_v37 }
 0x20c   :  { %v276_v42 = vpop.eup %275 }
 0x20d   :  { %v108_v43 = vmul.f32 %v276_v42, %v102_v34  ;;  %v226_v34 = vrot.slane %v222_v31, %v393_v6  ;;  %v238_v42 = vstv %s237_s1 }
 0x20e   :  { %vm239_vm8 = vcmp.eq.s32.totalorder %v238_v42, 1 }
 0x20f   :  { %v118_v45 = vsel %vm115_vm9, %v108_v43, %v93_v32  ;;  %vm240_vm9 = vmand %vm235_vm7, %vm239_vm8 }
 0x210   :  { %v121_v46 = vmul.f32 0.2, %v118_v45 }
 0x212   :  { %v127_v47 = vadd.f32 %v126_v44, %v121_v46 }
 0x214   :  { %v128_v48 = vmul.f32 %v127_v47, %v127_v47 }
 0x216   :  { %v129_v49 = vsel %vm53_vm0, %v128_v48, 0.0 }
 0x217   :  { %130 = vadd.xlane.f32.xlu1 %v129_v49 }
 0x2a4   :  { %v131_v50 = vpop.xlane.xlu1 %130 }
 0x2a5   :  { %277 = vrsqrt.f32 %v131_v50 }
 0x2af   :  { %v278_v55 = vpop.eup %277 }
 0x2b0   :  { %v133_v56 = vmul.f32 %v278_v55, %v127_v47 }
 0x2b2   :  { %v143_v58 = vsel %vm140_vm12, %v133_v56, %v118_v45 }
 0x2b3   :  { %v146_v59 = vmul.f32 0.2, %v143_v58 }
 0x2b5   :  { %v152_v60 = vadd.f32 %v151_v57, %v146_v59 }
 0x2b7   :  { %v153_v61 = vmul.f32 %v152_v60, %v152_v60 }
 0x2b9   :  { %v154_v62 = vsel %vm53_vm0, %v153_v61, 0.0 }
 0x2ba   :  { %155 = vadd.xlane.f32.xlu0 %v154_v62 }
 0x347   :  { %v156_v63 = vpop.xlane.xlu0 %155 }
 0x348   :  { %279 = vrsqrt.f32 %v156_v63 }
 0x352   :  { %v280_v5 = vpop.eup %279 }
 0x353   :  { %v158_v7 = vmul.f32 %v280_v5, %v152_v60 }
 0x355   :  { %v168_v9 = vsel %vm165_vm15, %v158_v7, %v143_v58 }
 0x356   :  { %v171_v10 = vmul.f32 0.2, %v168_v9 }
 0x358   :  { %v177_v11 = vadd.f32 %v176_v8, %v171_v10 }
 0x35a   :  { %v178_v12 = vmul.f32 %v177_v11, %v177_v11 }
 0x35c   :  { %v179_v13 = vsel %vm53_vm0, %v178_v12, 0.0 }
 0x35d   :  { %180 = vadd.xlane.f32.xlu1 %v179_v13 }
 0x3ea   :  { %v181_v14 = vpop.xlane.xlu1 %180 }
 0x3eb   :  { %281 = vrsqrt.f32 %v181_v14 }
 0x3f5   :  { %v282_v19 = vpop.eup %281 }
 0x3f6   :  { %v183_v20 = vmul.f32 %v282_v19, %v177_v11 }
 0x3f8   :  { %v193_v22 = vsel %vm190_vm3, %v183_v20, %v168_v9 }
 0x3f9   :  { %v196_v23 = vmul.f32 0.2, %v193_v22 }
 0x3fb   :  { %v202_v24 = vadd.f32 %v201_v21, %v196_v23 }
 0x3fd   :  { %v203_v25 = vmul.f32 %v202_v24, %v202_v24 }
 0x3ff   :  { %v204_v26 = vsel %vm53_vm0, %v203_v25, 0.0 }
 0x400   :  { %205 = vadd.xlane.f32.xlu0 %v204_v26 }
 0x48d   :  { %v206_v27 = vpop.xlane.xlu0 %205 }
 0x48e   :  { %283 = vrsqrt.f32 %v206_v27 }
 0x498   :  { %v284_v32 = vpop.eup %283 }
 0x499   :  { %v208_v33 = vmul.f32 %v284_v32, %v202_v24 }
 0x49b   :  { %v218_v35 = vsel %vm215_vm6, %v208_v33, %v193_v22 }
 0x49c   :  { %v221_v36 = vmul.f32 0.2, %v218_v35 }
 0x49e   :  { %v227_v37 = vadd.f32 %v226_v34, %v221_v36 }
 0x4a0   :  { %v228_v38 = vmul.f32 %v227_v37, %v227_v37 }
 0x4a2   :  { %v229_v39 = vsel %vm53_vm0, %v228_v38, 0.0 }
 0x4a3   :  { %230 = vadd.xlane.f32.xlu1 %v229_v39 }
 0x530   :  { %v231_v40 = vpop.xlane.xlu1 %230 }
 0x531   :  { %285 = vrsqrt.f32 %v231_v40 }
 0x53b   :  { %v286_v6 = vpop.eup %285 }
 0x53c   :  { %v233_v43 = vmul.f32 %v286_v6, %v227_v37 }
 0x53e   :  { %v243_v44 = vsel %vm240_vm9, %v233_v43, %v218_v35 }
 0x53f   :  { %244 = vst.msk [vmem:[#allocation7] sm:$0xff] %vm53_vm0, %v243_v44 }
 0x540   :  { %332 = shalt.err (!%p329_p11)
}
 0x541   :  { %s333_s7 = scalar_lea.hbm %s456_s3, 128 }
 0x542   :  { %p334_p12 = scmp.ne.s32.totalorder %s456_s3, %s333_s7  ;;  %p337_p13 = scmp.lt.u32.totalorder %s333_s7, %s456_s3 }
 0x544   :  { %p339_p0 = pnand %p337_p13, %p334_p12 }
 0x546   :  { %342 = shalt.err (!%p339_p0)
}
 0x547   :  { %254 = dma.vmem_to_hbm [thread:$0]  %s252_s30, 128, %s456_s3, [#allocation4]  }
 0x548   :  { %347 = dma.done.wait [#allocation4], 128  }
 0x549   :  { %348 = vsyncadd [#allocation4], 4294967168 }
 0x54a   :  { %258 = vsyncpa [#allocation3], 1 }
 0x54b   :  { %259 = vsyncpa [#allocation4], 1 }
 0x54c   :  { %260 = vsyncpa [#allocation5], 1 }

</bundles_post_ra>
